<compile_context>
chip_gen: v7x
topology: tpu7x:2x2x1
jax: 0.10.0
libtpu: 0.0.40
codegen_flags: <defaults>
</compile_context>

<pallas_src>
import numpy as np
import jax
import jax.numpy as jnp
from jax.experimental import pallas as pl
from jax.experimental.pallas import tpu as pltpu


# ----------------------------------------------------------------------------
# Glue: filter bank generation (replicates F.affine_grid + F.grid_sample with
# align_corners=False, bilinear interpolation, zero padding).
# ----------------------------------------------------------------------------
def rot_img(x, theta):
    """Rotate images x: [M, C, H, W] by angle theta (torch rot_img semantics)."""
    M, C, H, W = x.shape
    cos = float(np.cos(theta))
    sin = float(np.sin(theta))
    # affine_grid base coords, align_corners=False
    xs = (2.0 * jnp.arange(W, dtype=jnp.float32) + 1.0) / W - 1.0   # width (x)
    ys = (2.0 * jnp.arange(H, dtype=jnp.float32) + 1.0) / H - 1.0   # height (y)
    gx = cos * xs[None, :] - sin * ys[:, None]                      # [H, W]
    gy = sin * xs[None, :] + cos * ys[:, None]                      # [H, W]
    # grid_sample unnormalization, align_corners=False
    px = ((gx + 1.0) * W - 1.0) / 2.0
    py = ((gy + 1.0) * H - 1.0) / 2.0
    x0 = jnp.floor(px); x1 = x0 + 1.0
    y0 = jnp.floor(py); y1 = y0 + 1.0
    wx1 = px - x0; wx0 = 1.0 - wx1
    wy1 = py - y0; wy0 = 1.0 - wy1

    def gather(yi, xi):
        valid = ((yi >= 0) & (yi < H) & (xi >= 0) & (xi < W)).astype(x.dtype)
        yc = jnp.clip(yi, 0, H - 1).astype(jnp.int32)
        xc = jnp.clip(xi, 0, W - 1).astype(jnp.int32)
        return x[:, :, yc, xc] * valid                              # [M, C, H, W]

    return (gather(y0, x0) * (wy0 * wx0) + gather(y0, x1) * (wy0 * wx1)
            + gather(y1, x0) * (wy1 * wx0) + gather(y1, x1) * (wy1 * wx1))


def generate_filter_bank(weight):
    """weight: [nfb, Co, Ci, g, K, K] -> filter bank [nfb, Co, g_rot, Ci, g, K, K]."""
    nfb, Co, Ci, g, K, _ = weight.shape
    w = weight.reshape(nfb * Co * Ci, g, K, K)
    banks = []
    for i in range(g):
        rot = rot_img(w, -np.pi * 2.0 / g * i)
        shifted = jnp.roll(jnp.arange(g), i)                        # cyclic shift
        rot = rot[:, shifted]
        banks.append(rot.reshape(nfb, Co, Ci, g, K, K))
    fb = jnp.stack(banks)                                           # [g, nfb, Co, Ci, g, K, K]
    return jnp.transpose(fb, (1, 2, 0, 3, 4, 5, 6))                 # [nfb, Co, g, Ci, g, K, K]


# ----------------------------------------------------------------------------
# Pallas kernel: same-padded conv2d as K LHS-shifted, lane-dense MXU matmuls
# over a batch block of Nb images (M = Nb*Ho rows per matmul).
# ----------------------------------------------------------------------------
def _conv_kernel(x_ref, w_ref, o_ref):
    # x_ref: (Nb, Hp, Wp*Cin)      bf16  zero-padded, lane-folded input rows
    # w_ref: (K, Wp*Cin, Wo*Cout)  bf16  banded (Toeplitz) weight, VMEM-resident
    # o_ref: (Nb, Ho, Wo*Cout)     f32   lane-dense output rows
    Nb, Hp, WC = x_ref.shape
    Ho = o_ref.shape[1]
    WoC = o_ref.shape[2]
    K = w_ref.shape[0]
    x = x_ref[...]                                                  # (Nb, Hp, WC) bf16

    def tap(kh):
        # bf16 LHS row-shift (half the bytes of shifting the f32 result);
        # Ho is a multiple of the bf16 sublane pack so the merge is layout-free.
        lhs = x[:, kh:kh + Ho, :].reshape(Nb * Ho, WC)
        return jnp.dot(lhs, w_ref[kh], preferred_element_type=jnp.float32)

    acc = tap(0)                                                    # init from kh=0 (no zero-init)
    for kh in range(1, K):                                          # K small & static -> unrolled
        acc = acc + tap(kh)
    o_ref[...] = acc.reshape(Nb, Ho, WoC).astype(o_ref.dtype)       # full-width unmasked store


def _pick_block_batch(N, target=8):
    """Largest divisor of N that is <= target, preferring a grid of >= 2 steps
    so both v7x TensorCores get work."""
    cands = [d for d in range(1, N + 1) if N % d == 0 and d <= target]
    two_step = [d for d in cands if N // d >= 2]
    return max(two_step) if two_step else max(cands)


def relaxed_group_conv(x, combination_weights, weight):
    """Forward pass of Relaxed_GroupConv.

    x                   : [N, Ci, g, H, W]   (float32)
    combination_weights : [g, nfb]
    weight              : [nfb, Co, Ci, g, K, K]
    returns             : [N, Co, g, H, W]
    """
    N, Ci, g, H, W = x.shape
    nfb, Co, _, _, K, _ = weight.shape
    assert K % 2 == 1, "same-padding formulation assumes odd kernel size"
    Cin, Cout = Ci * g, Co * g
    pad = (K - 1) // 2
    Hp, Wp = H + 2 * pad, W + 2 * pad
    Ho, Wo = Hp - K + 1, Wp - K + 1   # == H, W for odd K (matches conv2d, padding=(K-1)//2)

    # relaxed conv weights: (Co, g, Ci, g, K, K) -> OIHW -> HWIO (K, K, Cin, Cout)
    fb = generate_filter_bank(weight)
    relaxed = jnp.einsum('na,aon...->on...', combination_weights, fb)
    w_hwio = jnp.transpose(relaxed.reshape(Cout, Cin, K, K), (2, 3, 1, 0))

    # Banded (Toeplitz) weight slabs:
    #   w_banded[kh, p*Cin + cin, w*Cout + cout] = w_hwio[kh, p - w, cin, cout]  if 0 <= p-w < K
    p_idx = jnp.arange(Wp)
    w_idx = jnp.arange(Wo)
    kw_eff = p_idx[None, :] - w_idx[:, None]                        # (Wo, Wp)
    valid = ((kw_eff >= 0) & (kw_eff < K)).astype(w_hwio.dtype)
    kw_c = jnp.clip(kw_eff, 0, K - 1)
    t = w_hwio[:, kw_c] * valid[None, :, :, None, None]             # (K, Wo, Wp, Cin, Cout)
    w_banded = jnp.transpose(t, (0, 2, 3, 1, 4)).reshape(K, Wp * Cin, Wo * Cout)
    w_banded = w_banded.astype(jnp.bfloat16)                        # bf16 MXU operand

    # Lane-folded, zero-padded input: (N, Hp, Wp*Cin), bf16 (halves HBM traffic).
    x_nhwc = jnp.transpose(x.reshape(N, Cin, H, W), (0, 2, 3, 1))
    x_pad = jnp.pad(x_nhwc, ((0, 0), (pad, pad), (pad, pad), (0, 0)))
    x_fold = x_pad.reshape(N, Hp, Wp * Cin).astype(jnp.bfloat16)

    # Batch block size: several images per grid step stacked into the MXU M dim.
    Nb = _pick_block_batch(N, target=8)

    # Advisory cost + explicit VMEM budget (v5e scoped default is only 16 MiB).
    flops = 2 * N * Ho * K * (Wp * Cin) * (Wo * Cout)
    bytes_accessed = (N * Hp * Wp * Cin * 2            # x_fold (bf16)
                      + K * Wp * Cin * Wo * Cout * 2   # banded weight (bf16)
                      + N * Ho * Wo * Cout * 4)        # output (f32)
    x_blk = Nb * Hp * Wp * Cin * 2
    o_blk = Nb * Ho * Wo * Cout * 4
    w_bytes = K * Wp * Cin * Wo * Cout * 2
    vmem_limit = int(min(100 * 2**20,
                         max(32 * 2**20, 2 * (x_blk + o_blk + w_bytes) + 8 * 2**20)))

    out = pl.pallas_call(
        _conv_kernel,
        out_shape=jax.ShapeDtypeStruct((N, Ho, Wo * Cout), x.dtype),
        grid=(N // Nb,),
        in_specs=[
            pl.BlockSpec((Nb, Hp, Wp * Cin), lambda n: (n, 0, 0)),
            # constant index_map -> weight slabs stay resident in VMEM across steps
            pl.BlockSpec((K, Wp * Cin, Wo * Cout), lambda n: (0, 0, 0)),
        ],
        out_specs=pl.BlockSpec((Nb, Ho, Wo * Cout), lambda n: (n, 0, 0)),
        compiler_params=pltpu.CompilerParams(
            dimension_semantics=("parallel",),
            vmem_limit_bytes=vmem_limit),
        cost_estimate=pl.CostEstimate(flops=flops, transcendentals=0,
                                      bytes_accessed=bytes_accessed),
    )(x_fold, w_banded)

    # (N, Ho, Wo*Cout) -> (N, Ho, Wo, Cout) -> (N, Cout, Ho, Wo) -> (N, Co, g, Ho, Wo)
    out = out.reshape(N, Ho, Wo, Cout)
    return jnp.transpose(out, (0, 3, 1, 2)).reshape(N, Co, g, Ho, Wo)


# TODO(synk): save_channel_magnitude_image (matplotlib/PNG file I/O) and the
# batch_number counter are host-side side effects with no Pallas equivalent; omitted.

if __name__ == "__main__":
    in_channels, out_channels, kernel_size = 4, 4, 3
    group_order, num_filter_banks = 4, 2
    N, H, W = 8, 16, 16                     # N=8 -> Nb=4 images/step, grid=(2,)

    key = jax.random.PRNGKey(0)
    kx, kw = jax.random.split(key)

    # deterministic parameters per module __init__
    combination_weights = (jnp.ones((group_order, num_filter_banks), jnp.float32)
                           / num_filter_banks / group_order)
    stdv = float(np.sqrt(1.0 / (in_channels * kernel_size * kernel_size)))
    weight = jax.random.uniform(
        kw,
        (num_filter_banks, out_channels, in_channels, group_order,
         kernel_size, kernel_size),
        jnp.float32, minval=-stdv, maxval=stdv)

    x = jax.random.normal(kx, (N, in_channels, group_order, H, W), jnp.float32)

    out = jax.jit(relaxed_group_conv)(x, combination_weights, weight)
    out = jax.block_until_ready(out)
    assert out.shape == (N, out_channels, group_order, H, W)
    assert bool(jnp.all(jnp.isfinite(out)))

    # Numerical sanity check of the Pallas conv path against an XLA f32 conv
    # using the same relaxed weights (bf16 operands -> loose tolerance).
    fb = generate_filter_bank(weight)
    relaxed = jnp.einsum('na,aon...->on...', combination_weights, fb)
    w_oihw = relaxed.reshape(out_channels * group_order,
                             in_channels * group_order, kernel_size, kernel_size)
    pad = (kernel_size - 1) // 2
    ref = jax.lax.conv_general_dilated(
        x.reshape(N, in_channels * group_order, H, W), w_oihw,
        window_strides=(1, 1), padding=[(pad, pad), (pad, pad)],
        dimension_numbers=('NCHW', 'OIHW', 'NCHW'))
    ref = ref.reshape(N, out_channels, group_order, H, W)
    assert bool(jnp.allclose(out, ref, atol=5e-2, rtol=5e-2)), \
        float(jnp.max(jnp.abs(out - ref)))

    print("KERNEL_OK")
</pallas_src>

<mosaic_0001>
module attributes {stable_mosaic.version = 11 : i64} {
  func.func @_conv_kernel(%arg0: i32, %arg1: memref<4x18x288xbf16, #tpu.memory_space<vmem>>, %arg2: memref<3x288x256xbf16, #tpu.memory_space<vmem>>, %arg3: memref<4x16x256xf32, #tpu.memory_space<vmem>>) attributes {dimension_semantics = [#tpu.dimension_semantics<parallel>], iteration_bounds = array<i64: 2>, scalar_prefetch = 0 : i64, scratch_operands = 0 : i64, tpu.core_type = #tpu.core_type<tc>, window_params = [{transform_indices = @transform_0, window_bounds = array<i64: 4, 18, 288>}, {pipeline_mode = #tpu.pipeline_mode<synchronous>, transform_indices = @transform_1, window_bounds = array<i64: 3, 288, 256>}, {transform_indices = @transform_2, window_bounds = array<i64: 4, 16, 256>}]} {
    %c0 = arith.constant 0 : index
    %c0_0 = arith.constant 0 : index
    %c0_1 = arith.constant 0 : index
    %0 = vector.load %arg1[%c0, %c0_0, %c0_1] : memref<4x18x288xbf16, #tpu.memory_space<vmem>>, vector<4x18x288xbf16>
    %1 = vector.extract_strided_slice %0 {offsets = [0, 0, 0], sizes = [4, 16, 288], strides = [1, 1, 1]} : vector<4x18x288xbf16> to vector<4x16x288xbf16>
    %2 = vector.shape_cast %1 : vector<4x16x288xbf16> to vector<64x288xbf16>
    %c0_2 = arith.constant 0 : index
    %c0_3 = arith.constant 0 : index
    %c0_4 = arith.constant 0 : index
    %3 = vector.load %arg2[%c0_2, %c0_3, %c0_4] : memref<3x288x256xbf16, #tpu.memory_space<vmem>>, vector<1x288x256xbf16>
    %4 = vector.shape_cast %3 : vector<1x288x256xbf16> to vector<288x256xbf16>
    %cst = arith.constant dense<0.000000e+00> : vector<64x256xf32>
    %5 = tpu.matmul %2, %4, %cst {dimension_numbers = #tpu.dot_dimension_numbers<[1], [0], [0], [1], [0, 0, 1, 1], [], []>} : vector<64x288xbf16>, vector<288x256xbf16>, vector<64x256xf32> -> vector<64x256xf32>
    %6 = vector.extract_strided_slice %0 {offsets = [0, 1, 0], sizes = [4, 16, 288], strides = [1, 1, 1]} : vector<4x18x288xbf16> to vector<4x16x288xbf16>
    %7 = vector.shape_cast %6 : vector<4x16x288xbf16> to vector<64x288xbf16>
    %c1 = arith.constant 1 : index
    %c0_5 = arith.constant 0 : index
    %c0_6 = arith.constant 0 : index
    %8 = vector.load %arg2[%c1, %c0_5, %c0_6] : memref<3x288x256xbf16, #tpu.memory_space<vmem>>, vector<1x288x256xbf16>
    %9 = vector.shape_cast %8 : vector<1x288x256xbf16> to vector<288x256xbf16>
    %cst_7 = arith.constant dense<0.000000e+00> : vector<64x256xf32>
    %10 = tpu.matmul %7, %9, %cst_7 {dimension_numbers = #tpu.dot_dimension_numbers<[1], [0], [0], [1], [0, 0, 1, 1], [], []>} : vector<64x288xbf16>, vector<288x256xbf16>, vector<64x256xf32> -> vector<64x256xf32>
    %11 = arith.addf %5, %10 : vector<64x256xf32>
    %12 = vector.extract_strided_slice %0 {offsets = [0, 2, 0], sizes = [4, 16, 288], strides = [1, 1, 1]} : vector<4x18x288xbf16> to vector<4x16x288xbf16>
    %13 = vector.shape_cast %12 : vector<4x16x288xbf16> to vector<64x288xbf16>
    %c2 = arith.constant 2 : index
    %c0_8 = arith.constant 0 : index
    %c0_9 = arith.constant 0 : index
    %14 = vector.load %arg2[%c2, %c0_8, %c0_9] : memref<3x288x256xbf16, #tpu.memory_space<vmem>>, vector<1x288x256xbf16>
    %15 = vector.shape_cast %14 : vector<1x288x256xbf16> to vector<288x256xbf16>
    %cst_10 = arith.constant dense<0.000000e+00> : vector<64x256xf32>
    %16 = tpu.matmul %13, %15, %cst_10 {dimension_numbers = #tpu.dot_dimension_numbers<[1], [0], [0], [1], [0, 0, 1, 1], [], []>} : vector<64x288xbf16>, vector<288x256xbf16>, vector<64x256xf32> -> vector<64x256xf32>
    %17 = arith.addf %11, %16 : vector<64x256xf32>
    %18 = vector.shape_cast %17 : vector<64x256xf32> to vector<4x16x256xf32>
    %c0_11 = arith.constant 0 : index
    %c0_12 = arith.constant 0 : index
    %c0_13 = arith.constant 0 : index
    %19 = vector.load %arg3[%c0_11, %c0_12, %c0_13] : memref<4x16x256xf32, #tpu.memory_space<vmem>>, vector<4x16x256xf32>
    tpu.vector_store %arg3[%c0_11, %c0_12, %c0_13], %18 {strides = array<i32>} : memref<4x16x256xf32, #tpu.memory_space<vmem>>, vector<4x16x256xf32>,
    return
  }
  func.func @transform_0(%arg0: i32) -> (i32, i32, i32) {
    %c0_i32 = arith.constant 0 : i32
    %c0_i32_0 = arith.constant 0 : i32
    %c0_i32_1 = arith.constant 0 : i32
    return %arg0, %c0_i32, %c0_i32_0 : i32, i32, i32
  }
  func.func @transform_1(%arg0: i32) -> (i32, i32, i32) {
    %c0_i32 = arith.constant 0 : i32
    %c0_i32_0 = arith.constant 0 : i32
    %c0_i32_1 = arith.constant 0 : i32
    %c0_i32_2 = arith.constant 0 : i32
    return %c0_i32, %c0_i32_0, %c0_i32_1 : i32, i32, i32
  }
  func.func @transform_2(%arg0: i32) -> (i32, i32, i32) {
    %c0_i32 = arith.constant 0 : i32
    %c0_i32_0 = arith.constant 0 : i32
    %c0_i32_1 = arith.constant 0 : i32
    return %arg0, %c0_i32, %c0_i32_0 : i32, i32, i32
  }
}

</mosaic_0001>

<bundles_post_ra>
// kernel: relaxed_group_conv.1
= control target key start
LH: loop header
LB: loop body
LE: loop exit
PB: predicated region body
PF: predicated region fallthrough
CT: control target
= control target key end

     0   :  { %s2339_s9 = smov 0   ;;  %s3045_s0 = inlined_call_operand.vmem [shape: bf16[8,18,288], index: 0, kind: input, shape index: {}]   ;;  %s3046_s1 = inlined_call_operand.vmem [shape: bf16[3,288,256], index: 1, kind: input, shape index: {}]   ;;  %s3047_s2 = inlined_call_operand.vmem [shape: f32[8,16,256], index: 2, kind: output, shape index: {}]  }
   0x1 LB: > { %s1802_s10 = sadd.s32 4294967295, %s2321_s9   ;;  %p1806_p0 = scmp.ge.s32.totalorder %s2321_s9, 1  ;;  %s2321_s9 = sphi %s2339_s9, %s12_s9  }
   0x2   : > { %p114_p1 = scmp.lt.s32.totalorder %s2321_s9, 3 }
   0x4   : > { %p115_p2 = pnand %p1806_p0, %p114_p1 }
   0x5   : > { %v2141_v0 = vld [vmem:[%s3046_s1 + $0x124] ss:$8 sps:$4 sm:$0xff] (!%p115_p2)   ;;  %s1807_s13 = sshll.u32 (!%p115_p2), %s1802_s10, 2  ;;  %v2143_v1 = vld [vmem:[%s3046_s1 + $0x120] ss:$8 sps:$4 sm:$0xff] (!%p115_p2)   ;;  %v2323_v2 = vmov (!%p115_p2), 0  }
   0x6   : > { %118 = sbr.rel (%p115_p2) target bundleno = 399 (0x18f), region = 28  ;;  %787 = vmatprep.mubr.bf16.mxu0 (!%p115_p2), %v2323_v2  ;;  %p139_p3 = scmp.lt.s32.totalorder (!%p115_p2), %s1807_s13, 7  ;;  %682 = vmatprep.subr.bf16.mxu1 (!%p115_p2), %v2141_v0  ;;  %v2144_v3 = vld [vmem:[%s3046_s1 + $0x134] ss:$8 sps:$4 sm:$0xff] (!%p115_p2)   ;;  %v2146_v4 = vld [vmem:[%s3046_s1 + $0x130] ss:$8 sps:$4 sm:$0xff] (!%p115_p2)  }
   0x7   : > { %683 = vmatpush1.bf16.msra.mxu1 (!%p115_p2), %v2143_v1  ;;  %v2147_v5 = vld [vmem:[%s3046_s1 + $0x144] ss:$8 sps:$4 sm:$0xff] (!%p115_p2)   ;;  %v2152_v7 = vld [vmem:[%s3046_s1 + $0x220] ss:$8 sps:$4 sm:$0xff] (!%p115_p2)   ;;  %v2156_v9 = vld [vmem:[%s3046_s1 + $0x234] ss:$8 sps:$4 sm:$0xff] (!%p115_p2)  }
   0x8   : > { %684 = vmatprep.subr.bf16.mxu1 (!%p115_p2), %v2144_v3  ;;  %v2150_v6 = vld [vmem:[%s3046_s1 + $0x224] ss:$8 sps:$4 sm:$0xff] (!%p115_p2)   ;;  %v2149_v8 = vld [vmem:[%s3046_s1 + $0x140] ss:$8 sps:$4 sm:$0xff] (!%p115_p2)   ;;  %v2158_v10 = vld [vmem:[%s3046_s1 + $0x230] ss:$8 sps:$4 sm:$0xff] (!%p115_p2)  }
   0x9   : > { %755 = vmatprep.subr.bf16.mxu0 (!%p115_p2), %v2150_v6  ;;  %v2153_v11 = vld [vmem:[%s3046_s1 + $0x154] ss:$8 sps:$4 sm:$0xff] (!%p115_p2)   ;;  %vm213_vm0 = vsmask.f32 (!%p115_p2), 3328  ;;  %v2155_v12 = vld [vmem:[%s3046_s1 + $0x150] ss:$8 sps:$4 sm:$0xff] (!%p115_p2)  }
   0xa   : > { %756 = vmatpush1.bf16.msra.mxu0 (!%p115_p2), %v2152_v7  ;;  %vm214_vm1 = vsmask.f32 (!%p115_p2), 7440  ;;  %v2159_v21 = vld [vmem:[%s3046_s1 + $0x164] ss:$8 sps:$4 sm:$0xff] (!%p115_p2)   ;;  %v2161_v27 = vld [vmem:[%s3046_s1 + $0x160] ss:$8 sps:$4 sm:$0xff] (!%p115_p2)  }
   0xb   : > { %685 = vmatpush1.bf16.msra.mxu1 (!%p115_p2), %v2146_v4  ;;  %757 = vmatprep.subr.bf16.mxu0 (!%p115_p2), %v2156_v9  ;;  %v2164_v26 = vld [vmem:[%s3046_s1 + $0x104] ss:$8 sps:$4 sm:$0xff] (!%p115_p2)   ;;  %vm669_vm2 = vcmask (!%p115_p2), 261120   ;;  %vm2417_vm3 = vmor (!%p115_p2), %vm213_vm0, %vm214_vm1  ;;  %v2165_v32 = vld [vmem:[%s3046_s1 + $0x174] ss:$8 sps:$4 sm:$0xff] (!%p115_p2)   ;;  %vm1234_vm4 = vcmask (!%p115_p2), 1042432  }
   0xc   : > { %686 = vmatprep.subr.bf16.mxu1 (!%p115_p2), %v2147_v5  ;;  %vm1235_vm5 = vcmask (!%p115_p2), 1046532   ;;  %v2162_v45 = vld [vmem:[%s3046_s1 + $0x100] ss:$8 sps:$4 sm:$0xff] (!%p115_p2)   ;;  %v2167_v48 = vld [vmem:[%s3046_s1 + $0x170] ss:$8 sps:$4 sm:$0xff] (!%p115_p2)  }
   0xd   : > { %s3053_s13 = smov (!%p139_p3, %s1807_s13), 7  ;;  %v2168_v52 = vld [vmem:[%s3046_s1 + $0x184] ss:$8 sps:$4 sm:$0xff]   ;;  %v2170_v56 = vld [vmem:[%s3046_s1 + $0x180] ss:$8 sps:$4 sm:$0xff]   ;;  %vm2494_vm6 = vmor %vm1234_vm4, %vm1235_vm5 }
   0xe   : > { %s2131_s26 = smul.u32 36, %s3053_s13  ;;  %758 = vmatpush1.bf16.msra.mxu0 %v2158_v10  ;;  %v2171_v63 = vld [vmem:[%s3046_s1 + $0x194] ss:$8 sps:$4 sm:$0xff]   ;;  %v2177_v7 = vld [vmem:[%s3046_s1 + $0x110] ss:$8 sps:$4 sm:$0xff]  }
   0xf   : > { %687 = vmatpush1.bf16.msra.mxu1 %v2149_v8  ;;  %1153 = vmatprep.subr.bf16.mxu0 %v2164_v26  ;;  %v2243_v31 = vld [vmem:[%s3046_s1 + $0x2c4] ss:$8 sps:$4 sm:$0xff]  }
  0x10   : > { %s2384_s7 = scalar_lea.vmem %s3045_s0, %s2131_s26  ;;  %688 = vmatprep.subr.bf16.mxu1 %v2153_v11  ;;  %v2179_v11 = vld [vmem:[%s3046_s1 + $0x114] ss:$8 sps:$4 sm:$0xff]   ;;  %s2050_s26 = sshll.u32 %s3053_s13, 5 }
  0x11   : > { %v2393_v13 = vld [vmem:[%s2384_s7 + $0x8] sm:$0xf]  ;;  %v2396_v14 = vld [vmem:[%s2384_s7 + $0x14] sm:$0xf]  ;;  %v2399_v15 = vld [vmem:[%s2384_s7 + $0x20] sm:$0x1]  ;;  %s3024_s29 = scalar_lea.vmem %s3047_s2, %s2050_s26 }
  0x12   : > { %v231_v16 = vshrl.u32 %v2393_v13, 16  ;;  %v234_v17 = vshll.u32 %v2393_v13, 16  ;;  %v240_v18 = vshll.u32 %v2396_v14, 16  ;;  %v254_v19 = vshrl.u32 %v2396_v14, 16  ;;  %v2425_v33 = vld [vmem:[%s2384_s7 + $0x2c] sm:$0xf] }
  0x13   : > { %v260_v20 = vshll.u32 %v2399_v15, 16  ;;  %689 = vmatpush1.bf16.msra.mxu1 %v2155_v12  ;;  %v2428_v36 = vld [vmem:[%s2384_s7 + $0x38] sm:$0xf]  ;;  %v2431_v37 = vld [vmem:[%s2384_s7 + $0x44] sm:$0x1]  ;;  %v279_v38 = vshrl.u32 %v2425_v33, 16 }
  0x14   : > { %v233_v22 = vrot.slane %v231_v16, 4  ;;  %v236_v23 = vrot.slane %v234_v17, 5  ;;  %v242_v24 = vrot.slane %v240_v18, 5  ;;  %v256_v25 = vrot.slane %v254_v19, 4  ;;  %690 = vmatprep.subr.bf16.mxu1 %v2159_v21  ;;  %v2453_v55 = vld [vmem:[%s2384_s7 + $0x50] sm:$0xf] }
  0x15   : > { %v262_v30 = vrot.slane %v260_v20, 5  ;;  %v282_v39 = vshll.u32 %v2425_v33, 16  ;;  %v288_v40 = vshll.u32 %v2428_v36, 16  ;;  %v302_v41 = vshrl.u32 %v2428_v36, 16  ;;  %v2460_v58 = vld [vmem:[%s2384_s7 + $0x5c] sm:$0xf] }
  0x16   : > { %v237_v28 = vor.u32 %v236_v23, %v233_v22  ;;  %v257_v29 = vor.u32 %v256_v25, %v242_v24  ;;  %v1243_v44 = vrot.slane %v2396_v14, 5  ;;  %v308_v46 = vshll.u32 %v2431_v37, 16  ;;  %v2463_v59 = vld [vmem:[%s2384_s7 + $0x68] sm:$0x1]  ;;  %v2173_v17 = vld [vmem:[%s3046_s1 + $0x190] ss:$8 sps:$4 sm:$0xff]  }
  0x17   : > { %691 = vmatpush1.bf16.msra.mxu1 %v2161_v27  ;;  %v281_v49 = vrot.slane %v279_v38, 4  ;;  %v284_v50 = vrot.slane %v282_v39, 5  ;;  %v290_v51 = vrot.slane %v288_v40, 5  ;;  %v304_v53 = vrot.slane %v302_v41, 4  ;;  %v2499_v27 = vld [vmem:[%s2384_s7 + $0x74] sm:$0xf] }
  0x18   : > { %v238_v34 = vrot.slane %v237_v28, 4  ;;  %v258_v35 = vrot.slane %v257_v29, 4  ;;  %692 = vmatprep.subr.bf16.mxu1 %v2165_v32  ;;  %v310_v54 = vrot.slane %v308_v46, 5  ;;  %v327_v60 = vshrl.u32 %v2453_v55, 16  ;;  %v2502_v28 = vld [vmem:[%s2384_s7 + $0x80] sm:$0xf] }
  0x19   : > { %v285_v57 = vor.u32 %v284_v50, %v281_v49  ;;  %v330_v61 = vshll.u32 %v2453_v55, 16  ;;  %v305_v62 = vor.u32 %v304_v53, %v290_v51  ;;  %v336_v0 = vshll.u32 %v2460_v58, 16  ;;  %v2509_v32 = vld [vmem:[%s2384_s7 + $0x8c] sm:$0x1]  ;;  %v2176_v46 = vld [vmem:[%s3046_s1 + $0x1a0] ss:$8 sps:$4 sm:$0xff]  }
  0x1a   : > { %v243_v42 = vsel %vm2417_vm3, %v238_v34, %v242_v24  ;;  %v263_v43 = vsel %vm2417_vm3, %v258_v35, %v262_v30  ;;  %v350_v1 = vshrl.u32 %v2460_v58, 16  ;;  %v356_v3 = vshll.u32 %v2463_v59, 16  ;;  %v2180_v50 = vld [vmem:[%s3046_s1 + $0x1b4] ss:$8 sps:$4 sm:$0xff]  }
  0x1b   : > { %v1850_v47 = vcombine.low %v243_v42, %v263_v43  ;;  %693 = vmatpush1.bf16.msra.mxu1 %v2167_v48  ;;  %v286_v4 = vrot.slane %v285_v57, 4  ;;  %v329_v5 = vrot.slane %v327_v60, 4  ;;  %v332_v6 = vrot.slane %v330_v61, 5 }
  0x1c   : > { %694 = vmatprep.subr.bf16.mxu1 %v2168_v52  ;;  %v306_v8 = vrot.slane %v305_v62, 4  ;;  %v338_v9 = vrot.slane %v336_v0, 5  ;;  %v352_v10 = vrot.slane %v350_v1, 4  ;;  %v1249_v12 = vrot.slane %v2399_v15, 5  ;;  %v2174_v15 = vld [vmem:[%s3046_s1 + $0x1a4] ss:$8 sps:$4 sm:$0xff]  }
  0x1d   : > { %1896 = vmatmul.mubr.msk.bf16.vlgmr.msra.gmra.mrb[0].mxu0 %vm669_vm2, %v1850_v47  ;;  %v291_v16 = vsel %vm2417_vm3, %v286_v4, %v290_v51  ;;  %v333_v18 = vor.u32 %v332_v6, %v329_v5  ;;  %v1953_v19 = vrot.slane %v2393_v13, 9  ;;  %v358_v22 = vrot.slane %v356_v3, 5  ;;  %v2193_v52 = vld [vmem:[%s3046_s1 + $0x244] ss:$8 sps:$4 sm:$0xff]  }
  0x1e   : > { %1154 = vmatpush1.bf16.msra.mxu0 %v2162_v45  ;;  %797 = vmatprep.mubr.bf16.mxu0 %v2323_v2  ;;  %v311_v20 = vsel %vm2417_vm3, %v306_v8, %v310_v54  ;;  %v353_v21 = vor.u32 %v352_v10, %v338_v9  ;;  %v1248_v24 = vrot.slane %v1243_v44, 4  ;;  %v375_v34 = vshrl.u32 %v2499_v27, 16  ;;  %v2183_v3 = vld [vmem:[%s3046_s1 + $0x1c4] ss:$8 sps:$4 sm:$0xff]  }
  0x1f   : > { %1155 = vmatprep.subr.bf16.mxu0 %v2179_v11  ;;  %695 = vmatpush1.bf16.msra.mxu1 %v2170_v56  ;;  %v1853_v25 = vcombine.low %v291_v16, %v311_v20  ;;  %v334_v26 = vrot.slane %v333_v18, 4  ;;  %v2506_v29 = vsel %vm2494_vm6, %v1953_v19, %v1243_v44  ;;  %v378_v35 = vshll.u32 %v2499_v27, 16  ;;  %v2185_v11 = vld [vmem:[%s3046_s1 + $0x1c0] ss:$8 sps:$4 sm:$0xff]  }
  0x20   : > { %696 = vmatprep.subr.bf16.mxu1 %v2171_v63  ;;  %v354_v30 = vrot.slane %v353_v21, 4  ;;  %v384_v38 = vshll.u32 %v2502_v28, 16  ;;  %v398_v40 = vshrl.u32 %v2502_v28, 16  ;;  %v404_v41 = vshll.u32 %v2509_v32, 16  ;;  %v2182_v63 = vld [vmem:[%s3046_s1 + $0x1b0] ss:$8 sps:$4 sm:$0xff]  }
  0x21   : > { %v339_v39 = vsel %vm2417_vm3, %v334_v26, %v338_v9  ;;  %v377_v43 = vrot.slane %v375_v34, 4  ;;  %v380_v44 = vrot.slane %v378_v35, 5  ;;  %v2527_v48 = vsel %vm2494_vm6, %v1248_v24, %v1249_v12  ;;  %v2578_v20 = vld [vmem:[%s2384_s7] sm:$0xff]  ;;  %v2584_v21 = vld [vmem:[%s2384_s7 + $0x18] sm:$0x11] }
  0x22   : > { %1156 = vmatpush1.bf16.msra.mxu0 %v2177_v7  ;;  %v359_v42 = vsel %vm2417_vm3, %v354_v30, %v358_v22  ;;  %v386_v45 = vrot.slane %v384_v38, 5  ;;  %v400_v47 = vrot.slane %v398_v40, 4  ;;  %v1998_v53 = vcombine.low %v2506_v29, %v2527_v48  ;;  %v2189_v40 = vld [vmem:[%s3046_s1 + $0x1e4] ss:$8 sps:$4 sm:$0xff]  }
  0x23   : > { %697 = vmatpush1.bf16.msra.mxu1 %v2173_v17  ;;  %v1856_v49 = vcombine.low %v339_v39, %v359_v42  ;;  %v381_v51 = vor.u32 %v380_v44, %v377_v43  ;;  %v406_v56 = vrot.slane %v404_v41, 5  ;;  %v1955_v57 = vrot.slane %v2425_v33, 9  ;;  %1566 = vmatprep.subr.bf16.mxu0 %v2193_v52  ;;  %v2188_v39 = vld [vmem:[%s3046_s1 + $0x1d0] ss:$8 sps:$4 sm:$0xff]  }
  0x24   : > { %698 = vmatprep.subr.bf16.mxu1 %v2174_v15  ;;  %v401_v54 = vor.u32 %v400_v47, %v386_v45  ;;  %v1257_v60 = vrot.slane %v2428_v36, 5  ;;  %v1263_v62 = vrot.slane %v2431_v37, 5  ;;  %v1957_v5 = vrot.slane %v2453_v55, 9  ;;  %v2581_v15 = vld [vmem:[%s2384_s7 + $0xc] sm:$0xff] }
  0x25   : > { %1897 = vmatmul.mubr.msk.bf16.gmra.mrb[4].mxu0 %vm669_vm2, %v1853_v25  ;;  %v382_v61 = vrot.slane %v381_v51, 4  ;;  %v1271_v7 = vrot.slane %v2460_v58, 5  ;;  %v1277_v9 = vrot.slane %v2463_v59, 5  ;;  %v1959_v10 = vrot.slane %v2499_v27, 9  ;;  %v2186_v59 = vld [vmem:[%s3046_s1 + $0x1d4] ss:$8 sps:$4 sm:$0xff]  }
  0x26   : > { %807 = vmatprep.mubr.bf16.mxu0 %v2323_v2  ;;  %v402_v0 = vrot.slane %v401_v54, 4  ;;  %v2545_v1 = vsel %vm2494_vm6, %v1955_v57, %v1257_v60  ;;  %v1262_v4 = vrot.slane %v1257_v60, 4  ;;  %v1285_v18 = vrot.slane %v2502_v28, 5  ;;  %v2194_v54 = vld [vmem:[%s3046_s1 + $0x1e0] ss:$8 sps:$4 sm:$0xff]  }
  0x27   : > { %699 = vmatpush1.bf16.msra.mxu1 %v2176_v46  ;;  %v387_v37 = vsel %vm2417_vm3, %v382_v61, %v386_v45  ;;  %v2571_v16 = vsel %vm2494_vm6, %v1957_v5, %v1271_v7  ;;  %v1276_v17 = vrot.slane %v1271_v7, 4  ;;  %v1291_v26 = vrot.slane %v2509_v32, 5  ;;  %v2196_v60 = vld [vmem:[%s3046_s1 + $0x1f4] ss:$8 sps:$4 sm:$0xff]  }
  0x28   : > { %700 = vmatprep.subr.bf16.mxu1 %v2180_v50  ;;  %v407_v6 = vsel %vm2417_vm3, %v402_v0, %v406_v56  ;;  %v2560_v8 = vsel %vm2494_vm6, %v1262_v4, %v1263_v62  ;;  %v2592_v24 = vsel %vm2494_vm6, %v1959_v10, %v1285_v18  ;;  %v1290_v25 = vrot.slane %v1285_v18, 4  ;;  %v2191_v56 = vld [vmem:[%s3046_s1 + $0x240] ss:$8 sps:$4 sm:$0xff]   ;;  %v2633_v0 = vld [vmem:[%s2384_s7 + $0x30] sm:$0xff]  ;;  %v2202_v18 = vld [vmem:[%s3046_s1 + $0x204] ss:$8 sps:$4 sm:$0xff]  }
  0x29   : > { %v2001_v12 = vcombine.low %v2545_v1, %v2560_v8  ;;  %v1859_v19 = vcombine.low %v387_v37, %v407_v6  ;;  %v2588_v22 = vsel %vm2494_vm6, %v1276_v17, %v1277_v9  ;;  %v217_v30 = vshrl.u32 %v2578_v20, 16  ;;  %v2201_v9 = vld [vmem:[%s3046_s1 + $0x1f0] ss:$8 sps:$4 sm:$0xff]  }
  0x2a   : > { %v220_v34 = vshll.u32 %v2578_v20, 16  ;;  %v226_v35 = vshll.u32 %v2581_v15, 16  ;;  %v244_v38 = vshrl.u32 %v2581_v15, 16  ;;  %v250_v41 = vshll.u32 %v2584_v21, 16 }
  0x2b   : > { %701 = vmatpush1.bf16.msra.mxu1 %v2182_v63  ;;  %v1900_v32 = vcombine.low %v2578_v20, %v2581_v15  ;;  %v219_v42 = vrot.slane %v217_v30, 4  ;;  %v2004_v46 = vcombine.low %v2571_v16, %v2588_v22  ;;  %v2613_v47 = vsel %vm2494_vm6, %v1290_v25, %v1291_v26  ;;  %v2630_v63 = vld [vmem:[%s2384_s7 + $0x24] sm:$0xff]  ;;  %v2198_v30 = vld [vmem:[%s3046_s1 + $0x250] ss:$8 sps:$4 sm:$0xff]  }
  0x2c   : > { %702 = vmatprep.subr.bf16.mxu1 %v2183_v3  ;;  %v222_v43 = vrot.slane %v220_v34, 5  ;;  %v228_v44 = vrot.slane %v226_v35, 5  ;;  %v246_v45 = vrot.slane %v244_v38, 4  ;;  %v252_v51 = vrot.slane %v250_v41, 5  ;;  %v2636_v3 = vld [vmem:[%s2384_s7 + $0x3c] sm:$0x11] }
  0x2d   : > { %1898 = vmatmul.mubr.msk.bf16.gmra.mrb[8].mxu0 %vm669_vm2, %v1856_v49  ;;  %v2007_v52 = vcombine.low %v2592_v24, %v2613_v47  ;;  %v1902_v57 = vcombine.low %v2393_v13, %v2396_v14  ;;  %v265_v4 = vshrl.u32 %v2630_v63, 16  ;;  %v268_v5 = vshll.u32 %v2630_v63, 16  ;;  %v2200_v14 = vld [vmem:[%s3046_s1 + $0x254] ss:$8 sps:$4 sm:$0xff]   ;;  %v2206_v38 = vld [vmem:[%s3046_s1 + $0x264] ss:$8 sps:$4 sm:$0xff]  }
  0x2e   : > { %817 = vmatprep.mubr.bf16.mxu0 %v2323_v2  ;;  %v223_v49 = vor.u32 %v222_v43, %v219_v42  ;;  %v247_v50 = vor.u32 %v246_v45, %v228_v44  ;;  %v274_v37 = vshll.u32 %v2633_v0, 16  ;;  %v292_v13 = vshrl.u32 %v2633_v0, 16  ;;  %v2208_v41 = vld [vmem:[%s3046_s1 + $0x214] ss:$8 sps:$4 sm:$0xff]   ;;  %v2681_v42 = vld [vmem:[%s2384_s7 + $0x48] sm:$0xff] }
  0x2f   : > { %703 = vmatpush1.bf16.msra.mxu1 %v2185_v11  ;;  %v267_v11 = vrot.slane %v265_v4, 4  ;;  %v270_v17 = vrot.slane %v268_v5, 5  ;;  %v298_v25 = vshll.u32 %v2636_v3, 16  ;;  %v1904_v26 = vcombine.high %v2630_v63, %v2633_v0  ;;  %v2204_v43 = vld [vmem:[%s3046_s1 + $0x260] ss:$8 sps:$4 sm:$0xff]  }
  0x30   : > { %704 = vmatprep.subr.bf16.mxu1 %v2186_v59  ;;  %v224_v61 = vrot.slane %v223_v49, 4  ;;  %v248_v62 = vrot.slane %v247_v50, 4  ;;  %v294_v59 = vrot.slane %v292_v13, 4  ;;  %v1903_v35 = vcombine.low %v2630_v63, %v2633_v0  ;;  %v2687_v49 = vld [vmem:[%s2384_s7 + $0x54] sm:$0xff] }
  0x31   : > { %v271_v34 = vor.u32 %v270_v17, %v267_v11  ;;  %v300_v45 = vrot.slane %v298_v25, 5  ;;  %v313_v50 = vshrl.u32 %v2681_v42, 16  ;;  %v2210_v11 = vld [vmem:[%s3046_s1 + $0x270] ss:$8 sps:$4 sm:$0xff]  }
  0x32   : > { %v2647_v6 = vsel %vm2417_vm3, %v224_v61, %v228_v44  ;;  %v2651_v7 = vsel %vm2417_vm3, %v248_v62, %v252_v51  ;;  %v316_v51 = vshll.u32 %v2681_v42, 16  ;;  %v2212_v61 = vld [vmem:[%s3046_s1 + $0x274] ss:$8 sps:$4 sm:$0xff]   ;;  %v2699_v62 = vld [vmem:[%s2384_s7 + $0x60] sm:$0x11] }
  0x33   : > { %705 = vmatpush1.bf16.msra.mxu1 %v2188_v39  ;;  %v1849_v10 = vcombine.high %v2647_v6, %v2651_v7  ;;  %v272_v44 = vrot.slane %v271_v34, 4  ;;  %v315_v4 = vrot.slane %v313_v50, 4  ;;  %v1848_v25 = vcombine.low %v2647_v6, %v2651_v7  ;;  %v2219_v34 = vld [vmem:[%s3046_s1 + $0x284] ss:$8 sps:$4 sm:$0xff]  }
  0x34   : > { %706 = vmatprep.subr.bf16.mxu1 %v2189_v40  ;;  %v2207_v40 = vld [vmem:[%s3046_s1 + $0x200] ss:$8 sps:$4 sm:$0xff]   ;;  %v318_v5 = vrot.slane %v316_v51, 5 }
  0x35   : > { %1899 = vmatmul.mubr.msk.bf16.gmra.mrb[12].mxu0 %vm669_vm2, %v1859_v19  ;;  %v276_v19 = vrot.slane %v274_v37, 5  ;;  %714 = vmatprep.mubr.bf16.mxu1 %v1849_v10  ;;  %v2213_v37 = vld [vmem:[%s3046_s1 + $0x210] ss:$8 sps:$4 sm:$0xff]   ;;  %v1907_v10 = vcombine.high %v2681_v42, %v2687_v49 }
  0x36   : > { %1185 = vmatprep.mubr.bf16.mxu0 %v2323_v2 }
  0x37   : > { %707 = vmatpush1.bf16.msra.mxu1 %v2194_v54  ;;  %v295_v39 = vor.u32 %v294_v59, %v276_v19  ;;  %v346_v59 = vshll.u32 %v2699_v62, 16 }
  0x38   : > { %708 = vmatprep.subr.bf16.mxu1 %v2196_v60  ;;  %v1905_v60 = vcombine.low %v2425_v33, %v2428_v36  ;;  %v2216_v33 = vld [vmem:[%s3046_s1 + $0x4] ss:$8 sps:$4 sm:$0xff]   ;;  %v2709_v36 = vsel %vm2417_vm3, %v272_v44, %v276_v19  ;;  %v1906_v19 = vcombine.low %v2681_v42, %v2687_v49  ;;  %v2217_v44 = vld [vmem:[%s3046_s1 + $0x280] ss:$8 sps:$4 sm:$0xff]  }
  0x39   : > { %v296_v54 = vrot.slane %v295_v39, 4  ;;  %v2222_v39 = vld [vmem:[%s3046_s1 + $0x14] ss:$8 sps:$4 sm:$0xff]  }
  0x3b   : > { %709 = vmatpush1.bf16.msra.mxu1 %v2201_v9  ;;  %v319_v9 = vor.u32 %v318_v5, %v315_v4  ;;  %v2718_v17 = vsel %vm2417_vm3, %v296_v54, %v300_v45 }
  0x3c   : > { %710 = vmatprep.subr.bf16.mxu1 %v2202_v18  ;;  %v1852_v45 = vcombine.high %v2709_v36, %v2718_v17 }
  0x3d   : > { %1948 = vmatmul.mubr.msk.bf16.vlgmr.msra.gmra.mrb[16].mxu0 %vm669_vm2, %v1902_v57  ;;  %v340_v57 = vshrl.u32 %v2687_v49, 16  ;;  %v320_v50 = vrot.slane %v319_v9, 4 }
  0x3e   : > { %1567 = vmatpush1.bf16.msra.mxu0 %v2191_v56  ;;  %1195 = vmatprep.mubr.bf16.mxu0 %v2323_v2  ;;  %v322_v56 = vshll.u32 %v2687_v49, 16 }
  0x3f   : > { %1568 = vmatprep.subr.bf16.mxu0 %v2200_v14  ;;  %711 = vmatpush1.bf16.msra.mxu1 %v2207_v40  ;;  %v342_v14 = vrot.slane %v340_v57, 4  ;;  %v2740_v40 = vld [vmem:[%s2384_s7 + $0x78] sm:$0xff] }
  0x40   : > { %v324_v13 = vrot.slane %v322_v56, 5  ;;  %712 = vmatprep.subr.bf16.mxu1 %v2208_v41  ;;  %v1908_v41 = vcombine.low %v2453_v55, %v2460_v58  ;;  %v370_v51 = vshll.u32 %v2740_v40, 16  ;;  %v388_v54 = vshrl.u32 %v2740_v40, 16  ;;  %v2220_v56 = vld [vmem:[%s3046_s1 + $0x10] ss:$8 sps:$4 sm:$0xff]  }
  0x41   : > { %v348_v58 = vrot.slane %v346_v59, 5 }
  0x42   : > { %1569 = vmatpush1.bf16.msra.mxu0 %v2198_v30  ;;  %v343_v18 = vor.u32 %v342_v14, %v324_v13  ;;  %v2214_v30 = vld [vmem:[%s3046_s1] ss:$8 sps:$4 sm:$0xff]   ;;  %v372_v4 = vrot.slane %v370_v51, 5  ;;  %v390_v5 = vrot.slane %v388_v54, 4  ;;  %v2225_v14 = vld [vmem:[%s3046_s1 + $0x294] ss:$8 sps:$4 sm:$0xff]  }
  0x43   : > { %1570 = vmatprep.subr.bf16.mxu0 %v2206_v38  ;;  %v2733_v38 = vld [vmem:[%s2384_s7 + $0x6c] sm:$0xff]  ;;  %713 = vmatpush1.bf16.msra.mxu1 %v2213_v37  ;;  %v1246_v37 = vrot.slane %v2584_v21, 5  ;;  %v325_v21 = vsel %vm2417_vm3, %v320_v50, %v324_v13  ;;  %v1851_v13 = vcombine.low %v2709_v36, %v2718_v17  ;;  %v2234_v36 = vld [vmem:[%s3046_s1 + $0x34] ss:$8 sps:$4 sm:$0xff]  }
  0x44   : > { %v361_v6 = vshrl.u32 %v2733_v38, 16  ;;  %v364_v7 = vshll.u32 %v2733_v38, 16  ;;  %1080 = vmatprep.subr.bf16.mxu1 %v2216_v33  ;;  %v344_v55 = vrot.slane %v343_v18, 4  ;;  %v1952_v33 = vrot.slane %v2578_v20, 9 }
  0x45   : > { %1949 = vmatmul.mubr.msk.bf16.gmra.mrb[20].mxu0 %vm669_vm2, %v1905_v60  ;;  %v1910_v18 = vcombine.high %v2733_v38, %v2740_v40  ;;  %v1909_v59 = vcombine.low %v2733_v38, %v2740_v40 }
  0x46   : > { %1571 = vmatpush1.bf16.msra.mxu0 %v2204_v43  ;;  %1205 = vmatprep.mubr.bf16.mxu0 %v2323_v2  ;;  %v1239_v43 = vrot.slane %v2581_v15, 5  ;;  %v363_v57 = vrot.slane %v361_v6, 4  ;;  %v366_v60 = vrot.slane %v364_v7, 5  ;;  %v2226_v7 = vld [vmem:[%s3046_s1 + $0x20] ss:$8 sps:$4 sm:$0xff]  }
  0x47   : > { %1572 = vmatprep.subr.bf16.mxu0 %v2212_v61  ;;  %715 = vmatmul.mubr.bf16.vlgmr.msra.gmra.mrb[0].mxu1 %v1848_v25  ;;  %v2758_v61 = vld [vmem:[%s2384_s7 + $0x84] sm:$0x11]  ;;  %v349_v25 = vsel %vm2417_vm3, %v344_v55, %v348_v58  ;;  %v2232_v55 = vld [vmem:[%s3046_s1 + $0x30] ss:$8 sps:$4 sm:$0xff]  }
  0x48   : > { %1081 = vmatpush1.bf16.msra.mxu1 %v2214_v30  ;;  %v1245_v9 = vrot.slane %v1239_v43, 4  ;;  %724 = vmatprep.mubr.bf16.mxu1 %v1852_v45  ;;  %v367_v30 = vor.u32 %v366_v60, %v363_v57  ;;  %v394_v6 = vshll.u32 %v2758_v61, 16  ;;  %v1855_v17 = vcombine.high %v325_v21, %v349_v25  ;;  %v2237_v57 = vld [vmem:[%s3046_s1 + $0x2b4] ss:$8 sps:$4 sm:$0xff]  }
  0x49   : > { %1082 = vmatprep.subr.bf16.mxu1 %v2222_v39  ;;  %v2223_v39 = vld [vmem:[%s3046_s1 + $0x290] ss:$8 sps:$4 sm:$0xff]  }
  0x4a   : > { %1573 = vmatpush1.bf16.msra.mxu0 %v2210_v11  ;;  %v2228_v11 = vld [vmem:[%s3046_s1 + $0x24] ss:$8 sps:$4 sm:$0xff]   ;;  %v2796_v45 = vsel %vm2494_vm6, %v1245_v9, %v1246_v37  ;;  %v368_v50 = vrot.slane %v367_v30, 4  ;;  %v396_v54 = vrot.slane %v394_v6, 5  ;;  %v1854_v37 = vcombine.low %v325_v21, %v349_v25  ;;  %v2241_v9 = vld [vmem:[%s3046_s1 + $0x2c0] ss:$8 sps:$4 sm:$0xff]  }
  0x4b   : > { %1574 = vmatprep.subr.bf16.mxu0 %v2219_v34  ;;  %v391_v34 = vor.u32 %v390_v5, %v372_v4  ;;  %v2235_v5 = vld [vmem:[%s3046_s1 + $0x2b0] ss:$8 sps:$4 sm:$0xff]   ;;  %v2249_v21 = vld [vmem:[%s3046_s1 + $0x2d4] ss:$8 sps:$4 sm:$0xff]   ;;  %v2252_v25 = vld [vmem:[%s3046_s1 + $0x64] ss:$8 sps:$4 sm:$0xff]  }
  0x4c   : > { %1083 = vmatpush1.bf16.msra.mxu1 %v2220_v56  ;;  %v1911_v56 = vcombine.low %v2499_v27, %v2502_v28  ;;  %v2240_v27 = vld [vmem:[%s3046_s1 + $0x44] ss:$8 sps:$4 sm:$0xff]   ;;  %v373_v28 = vsel %vm2417_vm3, %v368_v50, %v372_v4  ;;  %v2246_v4 = vld [vmem:[%s3046_s1 + $0x54] ss:$8 sps:$4 sm:$0xff]   ;;  %v2247_v30 = vld [vmem:[%s3046_s1 + $0x2d0] ss:$8 sps:$4 sm:$0xff]  }
  0x4d   : > { %1950 = vmatmul.mubr.msk.bf16.gmra.mrb[24].mxu0 %vm669_vm2, %v1908_v41  ;;  %v2231_v41 = vld [vmem:[%s3046_s1 + $0x2a4] ss:$8 sps:$4 sm:$0xff]   ;;  %1084 = vmatprep.subr.bf16.mxu1 %v2228_v11  ;;  %v392_v51 = vrot.slane %v391_v34, 4  ;;  %v2244_v11 = vld [vmem:[%s3046_s1 + $0x50] ss:$8 sps:$4 sm:$0xff]  }
  0x4e   : > { %1575 = vmatpush1.bf16.msra.mxu0 %v2217_v44  ;;  %1215 = vmatprep.mubr.bf16.mxu0 %v2323_v2  ;;  %v2792_v44 = vsel %vm2494_vm6, %v1952_v33, %v1239_v43  ;;  %v2229_v43 = vld [vmem:[%s3046_s1 + $0x2a0] ss:$8 sps:$4 sm:$0xff]   ;;  %v2265_v50 = vld [vmem:[%s3046_s1 + $0x84] ss:$8 sps:$4 sm:$0xff]  }
  0x4f   : > { %1576 = vmatprep.subr.bf16.mxu0 %v2225_v14  ;;  %725 = vmatmul.mubr.bf16.gmra.mrb[4].mxu1 %v1851_v13  ;;  %v1997_v58 = vcombine.high %v2792_v44, %v2796_v45  ;;  %v397_v60 = vsel %vm2417_vm3, %v392_v51, %v396_v54  ;;  %v2238_v14 = vld [vmem:[%s3046_s1 + $0x40] ss:$8 sps:$4 sm:$0xff]   ;;  %v2259_v13 = vld [vmem:[%s3046_s1 + $0x74] ss:$8 sps:$4 sm:$0xff]   ;;  %v2260_v51 = vld [vmem:[%s3046_s1 + $0x2f0] ss:$8 sps:$4 sm:$0xff]  }
  0x50   : > { %1085 = vmatpush1.bf16.msra.mxu1 %v2226_v7  ;;  %734 = vmatprep.mubr.bf16.mxu1 %v1855_v17  ;;  %v1858_v33 = vcombine.high %v373_v28, %v397_v60  ;;  %v1857_v34 = vcombine.low %v373_v28, %v397_v60  ;;  %v2250_v6 = vld [vmem:[%s3046_s1 + $0x60] ss:$8 sps:$4 sm:$0xff]   ;;  %v1901_v7 = vcombine.high %v2578_v20, %v2581_v15  ;;  %v2262_v17 = vld [vmem:[%s3046_s1 + $0x2f4] ss:$8 sps:$4 sm:$0xff]   ;;  %v2273_v28 = vld [vmem:[%s3046_s1 + $0x310] ss:$8 sps:$4 sm:$0xff]  }
  0x51   : > { %1086 = vmatprep.subr.bf16.mxu1 %v2234_v36  ;;  %v2257_v36 = vld [vmem:[%s3046_s1 + $0x70] ss:$8 sps:$4 sm:$0xff]   ;;  %v2263_v54 = vld [vmem:[%s3046_s1 + $0x80] ss:$8 sps:$4 sm:$0xff]  }
  0x52   : > { %1577 = vmatpush1.bf16.msra.mxu0 %v2223_v39  ;;  %v2256_v39 = vld [vmem:[%s3046_s1 + $0x2e4] ss:$8 sps:$4 sm:$0xff]   ;;  %v2276_v60 = vld [vmem:[%s3046_s1 + $0xa0] ss:$8 sps:$4 sm:$0xff]  }
  0x53   : > { %1578 = vmatprep.subr.bf16.mxu0 %v2231_v41  ;;  %v2254_v41 = vld [vmem:[%s3046_s1 + $0x2e0] ss:$8 sps:$4 sm:$0xff]  }
  0x54   : > { %1087 = vmatpush1.bf16.msra.mxu1 %v2232_v55  ;;  %v2267_v55 = vld [vmem:[%s3046_s1 + $0x300] ss:$8 sps:$4 sm:$0xff]  }
  0x55   : > { %1951 = vmatmul.mubr.msk.bf16.gmra.mrb[28].mxu0 %vm669_vm2, %v1911_v56  ;;  %1088 = vmatprep.subr.bf16.mxu1 %v2240_v27  ;;  %v2269_v56 = vld [vmem:[%s3046_s1 + $0x304] ss:$8 sps:$4 sm:$0xff]  }
  0x56   : > { %1579 = vmatpush1.bf16.msra.mxu0 %v2229_v43  ;;  %1598 = vmatprep.mubr.bf16.mxu0 %v1997_v58  ;;  %v2272_v43 = vld [vmem:[%s3046_s1 + $0x94] ss:$8 sps:$4 sm:$0xff]   ;;  %v2270_v58 = vld [vmem:[%s3046_s1 + $0x90] ss:$8 sps:$4 sm:$0xff]   ;;  %v2278_v27 = vld [vmem:[%s3046_s1 + $0xa4] ss:$8 sps:$4 sm:$0xff]  }
  0x57   : > { %1580 = vmatprep.subr.bf16.mxu0 %v2237_v57  ;;  %735 = vmatmul.mubr.bf16.gmra.mrb[8].mxu1 %v1854_v37  ;;  %v2275_v57 = vld [vmem:[%s3046_s1 + $0x314] ss:$8 sps:$4 sm:$0xff]   ;;  %v1253_v37 = vrot.slane %v2633_v0, 5 }
  0x58   : > { %1089 = vmatpush1.bf16.msra.mxu1 %v2238_v14  ;;  %744 = vmatprep.mubr.bf16.mxu1 %v1858_v33  ;;  %v2285_v14 = vld [vmem:[%s3046_s1 + $0xb4] ss:$8 sps:$4 sm:$0xff]   ;;  %v2283_v33 = vld [vmem:[%s3046_s1 + $0xb0] ss:$8 sps:$4 sm:$0xff]  }
  0x59   : > { %1090 = vmatprep.subr.bf16.mxu1 %v2246_v4  ;;  %v1954_v4 = vrot.slane %v2630_v63, 9 }
  0x5a   : > { %1581 = vmatpush1.bf16.msra.mxu0 %v2235_v5  ;;  %v2282_v5 = vld [vmem:[%s3046_s1 + $0x324] ss:$8 sps:$4 sm:$0xff]  }
  0x5b   : > { %1582 = vmatprep.subr.bf16.mxu0 %v2243_v31  ;;  %v2280_v31 = vld [vmem:[%s3046_s1 + $0x320] ss:$8 sps:$4 sm:$0xff]  }
  0x5c   : > { %1091 = vmatpush1.bf16.msra.mxu1 %v2244_v11  ;;  %v1259_v11 = vrot.slane %v1253_v37, 4 }
  0x5d   : > { %1092 = vmatprep.subr.bf16.mxu1 %v2252_v25  ;;  %v2291_v25 = vld [vmem:[%s3046_s1 + $0xc4] ss:$8 sps:$4 sm:$0xff]  }
  0x5e   : > { %1583 = vmatpush1.bf16.msra.mxu0 %v2241_v9  ;;  %v2288_v9 = vld [vmem:[%s3046_s1 + $0x334] ss:$8 sps:$4 sm:$0xff]  }
  0x5f   : > { %1584 = vmatprep.subr.bf16.mxu0 %v2249_v21  ;;  %745 = vmatmul.mubr.bf16.gmra.mrb[12].mxu1 %v1857_v34  ;;  %v1260_v21 = vrot.slane %v2636_v3, 5  ;;  %v2289_v34 = vld [vmem:[%s3046_s1 + $0xc0] ss:$8 sps:$4 sm:$0xff]   ;;  %v2294_v3 = vld [vmem:[%s3046_s1 + $0x344] ss:$8 sps:$4 sm:$0xff]  }
  0x60   : > { %1093 = vmatpush1.bf16.msra.mxu1 %v2250_v6  ;;  %1112 = vmatprep.mubr.bf16.mxu1 %v1901_v7  ;;  %v1254_v6 = vsel %vm2494_vm6, %v1954_v4, %v1253_v37  ;;  %v2297_v7 = vld [vmem:[%s3046_s1 + $0xd4] ss:$8 sps:$4 sm:$0xff]   ;;  %v1958_v37 = vrot.slane %v2733_v38, 9 }
  0x61   : > { %1094 = vmatprep.subr.bf16.mxu1 %v2259_v13  ;;  %v1267_v13 = vrot.slane %v2687_v49, 5 }
  0x62   : > { %1585 = vmatpush1.bf16.msra.mxu0 %v2247_v30  ;;  %v2286_v30 = vld [vmem:[%s3046_s1 + $0x330] ss:$8 sps:$4 sm:$0xff]  }
  0x63   : > { %1586 = vmatprep.subr.bf16.mxu0 %v2256_v39  ;;  %v1261_v39 = vsel %vm2494_vm6, %v1259_v11, %v1260_v21 }
  0x64   : > { %1095 = vmatpush1.bf16.msra.mxu1 %v2257_v36  ;;  %v2292_v36 = vld [vmem:[%s3046_s1 + $0x340] ss:$8 sps:$4 sm:$0xff]  }
  0x65   : > { %1096 = vmatprep.subr.bf16.mxu1 %v2265_v50  ;;  %v1956_v50 = vrot.slane %v2681_v42, 9 }
  0x66   : > { %1587 = vmatpush1.bf16.msra.mxu0 %v2254_v41  ;;  %v1996_v41 = vcombine.low %v2792_v44, %v2796_v45  ;;  %v2308_v44 = vld [vmem:[%s3046_s1 + $0x354] ss:$8 sps:$4 sm:$0xff]   ;;  %v2300_v45 = vld [vmem:[%s3046_s1 + $0xe4] ss:$8 sps:$4 sm:$0xff]  }
  0x67   : > { %1588 = vmatprep.subr.bf16.mxu0 %v2262_v17  ;;  %v2000_v17 = vcombine.high %v1254_v6, %v1261_v39 }
  0x68   : > { %1097 = vmatpush1.bf16.msra.mxu1 %v2263_v54  ;;  %v1273_v54 = vrot.slane %v1267_v13, 4 }
  0x69   : > { %1098 = vmatprep.subr.bf16.mxu1 %v2272_v43  ;;  %v2306_v43 = vld [vmem:[%s3046_s1 + $0x350] ss:$8 sps:$4 sm:$0xff]  }
  0x6a   : > { %1589 = vmatpush1.bf16.msra.mxu0 %v2260_v51  ;;  %v2295_v51 = vld [vmem:[%s3046_s1 + $0xd0] ss:$8 sps:$4 sm:$0xff]  }
  0x6b   : > { %1590 = vmatprep.subr.bf16.mxu0 %v2269_v56  ;;  %v1274_v56 = vrot.slane %v2699_v62, 5  ;;  %v2298_v62 = vld [vmem:[%s3046_s1 + $0xe0] ss:$8 sps:$4 sm:$0xff]  }
  0x6c   : > { %1099 = vmatpush1.bf16.msra.mxu1 %v2270_v58 }
  0x6d   : > { %1100 = vmatprep.subr.bf16.mxu1 %v2278_v27  ;;  %v1275_v58 = vsel %vm2494_vm6, %v1273_v54, %v1274_v56  ;;  %v2303_v27 = vld [vmem:[%s3046_s1 + $0xf4] ss:$8 sps:$4 sm:$0xff]  }
  0x6e   : > { %1591 = vmatpush1.bf16.msra.mxu0 %v2267_v55  ;;  %v1268_v55 = vsel %vm2494_vm6, %v1956_v50, %v1267_v13 }
  0x6f   : > { %1592 = vmatprep.subr.bf16.mxu0 %v2275_v57  ;;  %v1281_v57 = vrot.slane %v2740_v40, 5 }
  0x70   : > { %1101 = vmatpush1.bf16.msra.mxu1 %v2276_v60  ;;  %v2003_v60 = vcombine.high %v1268_v55, %v1275_v58 }
  0x71   : > { %1102 = vmatprep.subr.bf16.mxu1 %v2285_v14  ;;  %v1287_v14 = vrot.slane %v1281_v57, 4  ;;  %v1282_v4 = vsel %vm2494_vm6, %v1958_v37, %v1281_v57 }
  0x72   : > { %1593 = vmatpush1.bf16.msra.mxu0 %v2273_v28  ;;  %v1999_v28 = vcombine.low %v1254_v6, %v1261_v39 }
  0x73   : > { %1594 = vmatprep.subr.bf16.mxu0 %v2282_v5  ;;  %v2301_v5 = vld [vmem:[%s3046_s1 + $0xf0] ss:$8 sps:$4 sm:$0xff]  }
  0x74   : > { %1103 = vmatpush1.bf16.msra.mxu1 %v2283_v33 }
  0x75   : > { %1104 = vmatprep.subr.bf16.mxu1 %v2291_v25 }
  0x76   : > { %1595 = vmatpush1.bf16.msra.mxu0 %v2280_v31  ;;  %v1288_v31 = vrot.slane %v2758_v61, 5 }
  0x77   : > { %1596 = vmatprep.subr.bf16.mxu0 %v2288_v9  ;;  %v2002_v9 = vcombine.low %v1268_v55, %v1275_v58 }
  0x78   : > { %1105 = vmatpush1.bf16.msra.mxu1 %v2289_v34  ;;  %v1289_v33 = vsel %vm2494_vm6, %v1287_v14, %v1288_v31 }
  0x79   : > { %1106 = vmatprep.subr.bf16.mxu1 %v2297_v7  ;;  %v2006_v11 = vcombine.high %v1282_v4, %v1289_v33  ;;  %v2005_v61 = vcombine.low %v1282_v4, %v1289_v33 }
  0x7a   : > { %1597 = vmatpush1.bf16.msra.mxu0 %v2286_v30 }
  0x7b   : > { %1639 = vmatprep.subr.bf16.mxu0 %v2294_v3 }
  0x7c   : > { %1107 = vmatpush1.bf16.msra.mxu1 %v2295_v51 }
  0x7d   : > { %1599 = vmatmul.mubr.bf16.vlgmr.msra.gmra.mrb[16].mxu0 %v1996_v41  ;;  %1108 = vmatprep.subr.bf16.mxu1 %v2300_v45 }
  0x7e   : > { %1640 = vmatpush1.bf16.msra.mxu0 %v2292_v36  ;;  %1608 = vmatprep.mubr.bf16.mxu0 %v2000_v17 }
  0x7f   : > { %1641 = vmatprep.subr.bf16.mxu0 %v2308_v44 }
  0x80   : > { %1109 = vmatpush1.bf16.msra.mxu1 %v2298_v62 }
  0x81   : > { %1110 = vmatprep.subr.bf16.mxu1 %v2303_v27 }
  0x82   : > { %1642 = vmatpush1.bf16.msra.mxu0 %v2306_v43 }
  0x84   : > { %1111 = vmatpush1.bf16.msra.mxu1 %v2301_v5 }
  0x85   : > { %1609 = vmatmul.mubr.bf16.gmra.mrb[20].mxu0 %v1999_v28 }
  0x86   : > { %1618 = vmatprep.mubr.bf16.mxu0 %v2003_v60 }
  0x87   : > { %1113 = vmatmul.mubr.bf16.vlgmr.msra.gmra.mrb[16].mxu1 %v1900_v32 }
  0x88   : > { %1122 = vmatprep.mubr.bf16.mxu1 %v1904_v26 }
  0x8d   : > { %1619 = vmatmul.mubr.bf16.gmra.mrb[24].mxu0 %v2002_v9 }
  0x8e   : > { %1628 = vmatprep.mubr.bf16.mxu0 %v2006_v11 }
  0x8f   : > { %1123 = vmatmul.mubr.bf16.gmra.mrb[20].mxu1 %v1903_v35 }
  0x90   : > { %1132 = vmatprep.mubr.bf16.mxu1 %v1907_v10 }
  0x95   : > { %1629 = vmatmul.mubr.bf16.gmra.mrb[28].mxu0 %v2005_v61 }
  0x96   : > { %1671 = vmatprep.mubr.bf16.mxu0 %v2323_v2 }
  0x97   : > { %1133 = vmatmul.mubr.bf16.gmra.mrb[24].mxu1 %v1906_v19 }
  0x98   : > { %1142 = vmatprep.mubr.bf16.mxu1 %v1910_v18 }
  0x9d   : > { %2044 = vmatmul.mubr.msk.bf16.vlgmr.msra.gmra.mrb[16].mxu0 %vm669_vm2, %v1998_v53 }
  0x9e   : > { %1681 = vmatprep.mubr.bf16.mxu0 %v2323_v2 }
  0x9f   : > { %1143 = vmatmul.mubr.bf16.gmra.mrb[28].mxu1 %v1909_v59 }
  0xa5   : > { %2045 = vmatmul.mubr.msk.bf16.gmra.mrb[20].mxu0 %vm669_vm2, %v2001_v12 }
  0xa6   : > { %1691 = vmatprep.mubr.bf16.mxu0 %v2323_v2 }
  0xad   : > { %2046 = vmatmul.mubr.msk.bf16.gmra.mrb[24].mxu0 %vm669_vm2, %v2004_v46 }
  0xae   : > { %1701 = vmatprep.mubr.bf16.mxu0 %v2323_v2 }
  0xb5   : > { %2047 = vmatmul.mubr.msk.bf16.gmra.mrb[28].mxu0 %vm669_vm2, %v2007_v52 }
  0xf0   : > { %v789_v23 = vpop.f32.mrb[0].mxu0 }
  0xf1   : > { %v791_v29 = vpop.f32.mrb[1].mxu0 }
  0xf2   : > { %v793_v48 = vpop.f32.mrb[2].mxu0 }
  0xf3   : > { %v795_v53 = vpop.f32.mrb[3].mxu0 }
  0xf8   : > { %v799_v1 = vpop.f32.mrb[4].mxu0 }
  0xf9   : > { %v801_v8 = vpop.f32.mrb[5].mxu0 }
  0xfa   : > { %v803_v12 = vpop.f32.mrb[6].mxu0 }
  0xfb   : > { %v805_v20 = vpop.f32.mrb[7].mxu0 }
 0x100   : > { %v809_v15 = vpop.f32.mrb[8].mxu0 }
 0x101   : > { %v811_v32 = vpop.f32.mrb[9].mxu0 }
 0x102   : > { %v813_v16 = vpop.f32.mrb[10].mxu0 }
 0x103   : > { %v815_v22 = vpop.f32.mrb[11].mxu0 }
 0x108   : > { %v819_v46 = vpop.f32.mrb[12].mxu0 }
 0x109   : > { %v821_v63 = vpop.f32.mrb[13].mxu0 }
 0x10a   : > { %v823_v2 = vpop.f32.mrb[14].mxu0 }
 0x10b   : > { %v825_v0 = vpop.f32.mrb[15].mxu0 }
 0x11a   : > { %v716_v26 = vpop.f32.mrb[0].mxu1 }
 0x11b   : > { %v790_v24 = vadd.f32 %v789_v23, %v716_v26  ;;  %v718_v47 = vpop.f32.mrb[1].mxu1 }
 0x11c   : > { %v792_v52 = vadd.f32 %v791_v29, %v718_v47  ;;  %v720_v35 = vpop.f32.mrb[2].mxu1 }
 0x11d   : > { %v794_v42 = vadd.f32 %v793_v48, %v720_v35  ;;  %v722_v49 = vpop.f32.mrb[3].mxu1 }
 0x11e   : > { %v796_v10 = vadd.f32 %v795_v53, %v722_v49 }
 0x122   : > { %v726_v19 = vpop.f32.mrb[4].mxu1 }
 0x123   : > { %v800_v38 = vadd.f32 %v799_v1, %v726_v19  ;;  %v728_v40 = vpop.f32.mrb[5].mxu1 }
 0x124   : > { %v802_v18 = vadd.f32 %v801_v8, %v728_v40  ;;  %v730_v59 = vpop.f32.mrb[6].mxu1 }
 0x125   : > { %v804_v21 = vadd.f32 %v803_v12, %v730_v59  ;;  %v732_v25 = vpop.f32.mrb[7].mxu1 }
 0x126   : > { %v806_v30 = vadd.f32 %v805_v20, %v732_v25 }
 0x12a   : > { %v736_v34 = vpop.f32.mrb[8].mxu1 }
 0x12b   : > { %v810_v3 = vadd.f32 %v809_v15, %v736_v34  ;;  %v738_v6 = vpop.f32.mrb[9].mxu1 }
 0x12c   : > { %v812_v39 = vadd.f32 %v811_v32, %v738_v6  ;;  %v740_v13 = vpop.f32.mrb[10].mxu1 }
 0x12d   : > { %v814_v7 = vadd.f32 %v813_v16, %v740_v13  ;;  %v742_v41 = vpop.f32.mrb[11].mxu1 }
 0x12e   : > { %v816_v36 = vadd.f32 %v815_v22, %v742_v41 }
 0x132   : > { %v746_v17 = vpop.f32.mrb[12].mxu1 }
 0x133   : > { %v820_v50 = vadd.f32 %v819_v46, %v746_v17  ;;  %v748_v51 = vpop.f32.mrb[13].mxu1 }
 0x134   : > { %v822_v54 = vadd.f32 %v821_v63, %v748_v51  ;;  %v750_v56 = vpop.f32.mrb[14].mxu1 }
 0x135   : > { %v824_v44 = vadd.f32 %v823_v2, %v750_v56  ;;  %v752_v45 = vpop.f32.mrb[15].mxu1 }
 0x136   : > { %v826_v43 = vadd.f32 %v825_v0, %v752_v45 }
 0x15a   : > { %v1114_v62 = vpop.f32.mrb[16].mxu1 }
 0x15b   : > { %v1115_v55 = vadd.f32 %v1114_v62, %v790_v24  ;;  %v1116_v58 = vpop.f32.mrb[17].mxu1 }
 0x15c   : > { %v1117_v57 = vadd.f32 %v1116_v58, %v792_v52  ;;  %v1118_v27 = vpop.f32.mrb[18].mxu1 }
 0x15d   : > { %v1119_v28 = vadd.f32 %v1118_v27, %v794_v42  ;;  %v1120_v60 = vpop.f32.mrb[19].mxu1 }
 0x15e   : > { %v1121_v5 = vadd.f32 %v1120_v60, %v796_v10 }
 0x162   : > { %v1124_v37 = vpop.f32.mrb[20].mxu1 }
 0x163   : > { %v1125_v14 = vadd.f32 %v1124_v37, %v800_v38  ;;  %v1126_v31 = vpop.f32.mrb[21].mxu1 }
 0x164   : > { %v1127_v4 = vadd.f32 %v1126_v31, %v802_v18  ;;  %v1128_v33 = vpop.f32.mrb[22].mxu1 }
 0x165   : > { %v1129_v9 = vadd.f32 %v1128_v33, %v804_v21  ;;  %v1130_v11 = vpop.f32.mrb[23].mxu1 }
 0x166   : > { %v1131_v61 = vadd.f32 %v1130_v11, %v806_v30 }
 0x16a   : > { %v1134_v23 = vpop.f32.mrb[24].mxu1 }
 0x16b   : > { %v1135_v29 = vadd.f32 %v1134_v23, %v810_v3  ;;  %v1136_v48 = vpop.f32.mrb[25].mxu1 }
 0x16c   : > { %v1137_v53 = vadd.f32 %v1136_v48, %v812_v39  ;;  %v1138_v1 = vpop.f32.mrb[26].mxu1 }
 0x16d   : > { %v1139_v12 = vadd.f32 %v1138_v1, %v814_v7  ;;  %v1140_v20 = vpop.f32.mrb[27].mxu1 }
 0x16e   : > { %v1141_v16 = vadd.f32 %v1140_v20, %v816_v36 }
 0x170   : > { %v1673_v8 = vpop.f32.mrb[16].mxu0 }
 0x171   : > { %v2053_v15 = vadd.f32 %v1673_v8, %v1115_v55  ;;  %v1675_v32 = vpop.f32.mrb[17].mxu0 }
 0x172   : > { %v2056_v22 = vadd.f32 %v1675_v32, %v1117_v57  ;;  %v1677_v46 = vpop.f32.mrb[18].mxu0  ;;  %v1144_v26 = vpop.f32.mrb[28].mxu1 }
 0x173   : > { %1728 = vst [vmem:[%s3024_s29] sm:$0xff] %v2053_v15  ;;  %v2059_v63 = vadd.f32 %v1677_v46, %v1119_v28  ;;  %v1679_v2 = vpop.f32.mrb[19].mxu0  ;;  %v1145_v24 = vadd.f32 %v1144_v26, %v820_v50  ;;  %v1146_v47 = vpop.f32.mrb[29].mxu1 }
 0x174   : > { %1729 = vst [vmem:[%s3024_s29 + $0x8] sm:$0xff] %v2056_v22  ;;  %v2062_v0 = vadd.f32 %v1679_v2, %v1121_v5  ;;  %v1147_v52 = vadd.f32 %v1146_v47, %v822_v54  ;;  %v1148_v35 = vpop.f32.mrb[30].mxu1 }
 0x175   : > { %1730 = vst [vmem:[%s3024_s29 + $0x10] sm:$0xff] %v2059_v63  ;;  %v1149_v49 = vadd.f32 %v1148_v35, %v824_v44  ;;  %v1150_v10 = vpop.f32.mrb[31].mxu1 }
 0x176   : > { %1731 = vst [vmem:[%s3024_s29 + $0x18] sm:$0xff] %v2062_v0  ;;  %v1151_v40 = vadd.f32 %v1150_v10, %v826_v43 }
 0x178   : > { %v1683_v42 = vpop.f32.mrb[20].mxu0 }
 0x179   : > { %v2065_v19 = vadd.f32 %v1683_v42, %v1125_v14  ;;  %v1685_v38 = vpop.f32.mrb[21].mxu0 }
 0x17a   : > { %v2068_v18 = vadd.f32 %v1685_v38, %v1127_v4  ;;  %v1687_v59 = vpop.f32.mrb[22].mxu0 }
 0x17b   : > { %1732 = vst [vmem:[%s3024_s29 + $0x20] sm:$0xff] %v2065_v19  ;;  %v2071_v21 = vadd.f32 %v1687_v59, %v1129_v9  ;;  %v1689_v25 = vpop.f32.mrb[23].mxu0 }
 0x17c   : > { %1733 = vst [vmem:[%s3024_s29 + $0x28] sm:$0xff] %v2068_v18  ;;  %v2074_v30 = vadd.f32 %v1689_v25, %v1131_v61 }
 0x17d   : > { %1734 = vst [vmem:[%s3024_s29 + $0x30] sm:$0xff] %v2071_v21 }
 0x17e   : > { %1735 = vst [vmem:[%s3024_s29 + $0x38] sm:$0xff] %v2074_v30 }
 0x180   : > { %v1693_v34 = vpop.f32.mrb[24].mxu0 }
 0x181   : > { %v2077_v3 = vadd.f32 %v1693_v34, %v1135_v29  ;;  %v1695_v6 = vpop.f32.mrb[25].mxu0 }
 0x182   : > { %v2080_v39 = vadd.f32 %v1695_v6, %v1137_v53  ;;  %v1697_v13 = vpop.f32.mrb[26].mxu0 }
 0x183   : > { %1736 = vst [vmem:[%s3024_s29 + $0x40] sm:$0xff] %v2077_v3  ;;  %v2083_v7 = vadd.f32 %v1697_v13, %v1139_v12  ;;  %v1699_v41 = vpop.f32.mrb[27].mxu0 }
 0x184   : > { %1737 = vst [vmem:[%s3024_s29 + $0x48] sm:$0xff] %v2080_v39  ;;  %v2086_v36 = vadd.f32 %v1699_v41, %v1141_v16 }
 0x185   : > { %1738 = vst [vmem:[%s3024_s29 + $0x50] sm:$0xff] %v2083_v7 }
 0x186   : > { %1739 = vst [vmem:[%s3024_s29 + $0x58] sm:$0xff] %v2086_v36 }
 0x188   : > { %v1703_v17 = vpop.f32.mrb[28].mxu0 }
 0x189   : > { %v2089_v50 = vadd.f32 %v1703_v17, %v1145_v24  ;;  %v1705_v51 = vpop.f32.mrb[29].mxu0 }
 0x18a   : > { %v2092_v54 = vadd.f32 %v1705_v51, %v1147_v52  ;;  %v1707_v56 = vpop.f32.mrb[30].mxu0 }
 0x18b   : > { %1740 = vst [vmem:[%s3024_s29 + $0x60] sm:$0xff] %v2089_v50  ;;  %v2095_v44 = vadd.f32 %v1707_v56, %v1149_v49  ;;  %v1709_v45 = vpop.f32.mrb[31].mxu0 }
 0x18c   : > { %1741 = vst [vmem:[%s3024_s29 + $0x68] sm:$0xff] %v2092_v54  ;;  %v2098_v43 = vadd.f32 %v1709_v45, %v1151_v40 }
 0x18d   : > { %1742 = vst [vmem:[%s3024_s29 + $0x70] sm:$0xff] %v2095_v44 }
 0x18e   : > { %1743 = vst [vmem:[%s3024_s29 + $0x78] sm:$0xff] %v2098_v43 }
 0x18f PF: > { %s12_s9 = sadd.s32 1, %s2321_s9  }
 0x190   : > { %p9_p4 = scmp.ge.s32.totalorder %s12_s9, 4  }
 0x192   :  { %11 = sbr.rel (!%p9_p4) target bundleno = 1 (0x1), region = 60 }

</bundles_post_ra>
